<compile_context>
chip_gen: v7x
topology: tpu7x:2x2x1
jax: 0.10.0
libtpu: 0.0.40
codegen_flags: <defaults>
</compile_context>

<pallas_src>
import jax
import jax.numpy as jnp
from jax.experimental import pallas as pl
from jax.experimental.pallas import tpu as pltpu

LANE = 128      # TPU lane width (fast axis) -- batch tiles are multiples of this
MAX_TM = 4096   # batch-tile cap; double-buffered VMEM footprint at 4096 is ~0.7 MiB


def _round_up(x, m):
    return ((x + m - 1) // m) * m


def _pick_tile(batch, max_tm):
    """Batch tile (lane axis).  Small batches: one exact block (block == array dim rule).
    Larger batches: a multiple of 128, sized so the grid has >= 2 steps when possible
    (v7x megacore); the ragged last block is handled by Pallas OOB read-pad/write-mask."""
    if batch <= LANE:
        return batch
    return min(max_tm, _round_up(pl.cdiv(batch, 2), LANE))


def _qnet_kernel(xt_ref, w1_ref, b1_ref, w2_ref, b2_ref, o_ref):
    # Fused MLP hot path, batch on lanes: y^T = w2 @ relu(w1 @ x^T + b1) + b2
    xt = xt_ref[...]                                                     # (In, TM)
    h = jnp.dot(w1_ref[...], xt, preferred_element_type=jnp.float32)    # (H, TM) f32
    h = jnp.maximum(h + b1_ref[...], 0.0)                                # bias + ReLU in f32
    h = h.astype(w2_ref.dtype)                                           # bf16 path re-cast
    y = jnp.dot(w2_ref[...], h, preferred_element_type=jnp.float32)     # (Out, TM) f32
    o_ref[...] = (y + b2_ref[...]).astype(o_ref.dtype)


def linear_qnet_forward_t(xt, w1, b1, w2, b2, *, max_tm=MAX_TM):
    """Core kernel on batch-last layout.

    xt: (In, B); w1: (H, In); b1: (H, 1); w2: (Out, H); b2: (Out, 1)  ->  y^T (Out, B).
    """
    In, B = xt.shape
    H, In2 = w1.shape
    Out, H2 = w2.shape
    assert In == In2 and H == H2 and b1.shape == (H, 1) and b2.shape == (Out, 1)

    tm = _pick_tile(B, max_tm)
    grid = (pl.cdiv(B, tm),)

    return pl.pallas_call(
        _qnet_kernel,
        out_shape=jax.ShapeDtypeStruct((Out, B), jnp.float32),
        grid_spec=pl.GridSpec(
            grid=grid,
            in_specs=[
                # activation stream: one (In, TM) lane-dense tile per grid step
                pl.BlockSpec((In, tm), lambda i: (0, i)),
                # weights / biases: same block every step -> VMEM-resident, DMA'd once
                pl.BlockSpec((H, In), lambda i: (0, 0)),
                pl.BlockSpec((H, 1), lambda i: (0, 0)),
                pl.BlockSpec((Out, H), lambda i: (0, 0)),
                pl.BlockSpec((Out, 1), lambda i: (0, 0)),
            ],
            out_specs=pl.BlockSpec((Out, tm), lambda i: (0, i)),
        ),
        # batch tiles are independent -> parallel axis (megacore on v7x; no-op on 1-TC chips)
        compiler_params=pltpu.CompilerParams(dimension_semantics=("parallel",)),
    )(xt, w1, b1, w2, b2)


def linear_qnet_forward(x, w1, b1, w2, b2, *, use_bf16=False, max_tm=MAX_TM):
    """PyTorch-compatible entry: x (B, In), weights in torch (out, in) layout -> (B, Out).

    The two transposes below are a single layout pass each; callers that can keep
    activations in (features, batch) layout should call linear_qnet_forward_t directly.
    """
    xt = x.T
    if use_bf16:
        # Large-batch training config: bf16 matmul operands, f32 accumulation/epilogue.
        xt = xt.astype(jnp.bfloat16)
        w1 = w1.astype(jnp.bfloat16)
        w2 = w2.astype(jnp.bfloat16)
    yt = linear_qnet_forward_t(xt, w1, b1, w2, b2, max_tm=max_tm)
    return yt.T


def init_qnet_params(key, input_size, hidden_size, output_size):
    """Deterministic init mimicking PyTorch nn.Linear default (U[-1/sqrt(fan_in), +1/sqrt(fan_in)]).

    Weights are kept in PyTorch's native (out_features, in_features) layout; biases are
    stored as columns (out_features, 1) so they broadcast along the lane (batch) axis.
    """
    k1, k2, k3, k4 = jax.random.split(key, 4)
    bound1 = 1.0 / jnp.sqrt(jnp.float32(input_size))
    bound2 = 1.0 / jnp.sqrt(jnp.float32(hidden_size))
    w1 = jax.random.uniform(k1, (hidden_size, input_size), jnp.float32, -bound1, bound1)
    b1 = jax.random.uniform(k2, (hidden_size, 1), jnp.float32, -bound1, bound1)
    w2 = jax.random.uniform(k3, (output_size, hidden_size), jnp.float32, -bound2, bound2)
    b2 = jax.random.uniform(k4, (output_size, 1), jnp.float32, -bound2, bound2)
    return w1, b1, w2, b2


# TODO(synk): Linear_QNet.save() is host-side torch.save file I/O; no Pallas equivalent.

if __name__ == "__main__":
    # Shapes consistent with the module: Linear_QNet(input_size=16, hidden_size=32, output_size=4)
    batch, input_size, hidden_size, output_size = 8, 16, 32, 4

    key = jax.random.PRNGKey(0)
    kx, kp, kx2, kx3 = jax.random.split(key, 4)
    x = jax.random.normal(kx, (batch, input_size), jnp.float32)
    w1, b1, w2, b2 = init_qnet_params(kp, input_size, hidden_size, output_size)

    def ref_fwd(xx):
        return jnp.maximum(xx @ w1.T + b1.T, 0.0) @ w2.T + b2.T

    # 1) small batch: single exact tile (tm == B).
    out = jax.block_until_ready(linear_qnet_forward(x, w1, b1, w2, b2))
    assert out.shape == (batch, output_size)
    assert jnp.allclose(out, ref_fwd(x), atol=1e-5, rtol=1e-5)

    # 2) replay-buffer-sized batch: 2 parallel tiles (both v7x TensorCores get work).
    xb = jax.random.normal(kx2, (1024, input_size), jnp.float32)
    out_b = jax.block_until_ready(linear_qnet_forward(xb, w1, b1, w2, b2))
    assert out_b.shape == (1024, output_size)
    assert jnp.allclose(out_b, ref_fwd(xb), atol=1e-5, rtol=1e-5)

    # 3) ragged batch (B % 128 != 0): exercises the cdiv grid + masked boundary block.
    xr = jax.random.normal(kx3, (1000, input_size), jnp.float32)
    out_r = jax.block_until_ready(linear_qnet_forward(xr, w1, b1, w2, b2))
    assert out_r.shape == (1000, output_size)
    assert jnp.allclose(out_r, ref_fwd(xr), atol=1e-5, rtol=1e-5)

    # 4) bf16 matmul-operand path (large-batch training config), loose tolerance.
    out_bf = jax.block_until_ready(linear_qnet_forward(xb, w1, b1, w2, b2, use_bf16=True))
    assert out_bf.shape == (1024, output_size)
    assert jnp.allclose(out_bf, ref_fwd(xb), atol=5e-2, rtol=5e-2)

    print("KERNEL_OK")
</pallas_src>

<mosaic_0001>
module attributes {stable_mosaic.version = 11 : i64} {
  func.func @_qnet_kernel(%arg0: i32, %arg1: memref<16x8xf32, #tpu.memory_space<vmem>>, %arg2: memref<32x16xf32, #tpu.memory_space<vmem>>, %arg3: memref<32x1xf32, #tpu.memory_space<vmem>>, %arg4: memref<4x32xf32, #tpu.memory_space<vmem>>, %arg5: memref<4x1xf32, #tpu.memory_space<vmem>>, %arg6: memref<4x8xf32, #tpu.memory_space<vmem>>) attributes {dimension_semantics = [#tpu.dimension_semantics<parallel>], iteration_bounds = array<i64: 1>, scalar_prefetch = 0 : i64, scratch_operands = 0 : i64, tpu.core_type = #tpu.core_type<tc>, window_params = [{transform_indices = @transform_0, window_bounds = array<i64: 16, 8>}, {pipeline_mode = #tpu.pipeline_mode<synchronous>, transform_indices = @transform_1, window_bounds = array<i64: 32, 16>}, {pipeline_mode = #tpu.pipeline_mode<synchronous>, transform_indices = @transform_2, window_bounds = array<i64: 32, 1>}, {pipeline_mode = #tpu.pipeline_mode<synchronous>, transform_indices = @transform_3, window_bounds = array<i64: 4, 32>}, {pipeline_mode = #tpu.pipeline_mode<synchronous>, transform_indices = @transform_4, window_bounds = array<i64: 4, 1>}, {transform_indices = @transform_5, window_bounds = array<i64: 4, 8>}]} {
    %c0 = arith.constant 0 : index
    %c0_0 = arith.constant 0 : index
    %0 = vector.load %arg1[%c0, %c0_0] : memref<16x8xf32, #tpu.memory_space<vmem>>, vector<16x8xf32>
    %c0_1 = arith.constant 0 : index
    %c0_2 = arith.constant 0 : index
    %1 = vector.load %arg2[%c0_1, %c0_2] : memref<32x16xf32, #tpu.memory_space<vmem>>, vector<32x16xf32>
    %cst = arith.constant dense<0.000000e+00> : vector<32x8xf32>
    %2 = tpu.matmul %1, %0, %cst {dimension_numbers = #tpu.dot_dimension_numbers<[1], [0], [0], [1], [0, 0, 1, 1], [], []>} : vector<32x16xf32>, vector<16x8xf32>, vector<32x8xf32> -> vector<32x8xf32>
    %c0_3 = arith.constant 0 : index
    %c0_4 = arith.constant 0 : index
    %3 = vector.load %arg3[%c0_3, %c0_4] : memref<32x1xf32, #tpu.memory_space<vmem>>, vector<32x1xf32>
    %4 = vector.broadcast %3 : vector<32x1xf32> to vector<32x8xf32>
    %5 = arith.addf %2, %4 : vector<32x8xf32>
    %cst_5 = arith.constant 0.000000e+00 : f32
    %6 = vector.broadcast %cst_5 : f32 to vector<32x8xf32>
    %7 = arith.maximumf %5, %6 : vector<32x8xf32>
    %c0_6 = arith.constant 0 : index
    %c0_7 = arith.constant 0 : index
    %8 = vector.load %arg4[%c0_6, %c0_7] : memref<4x32xf32, #tpu.memory_space<vmem>>, vector<4x32xf32>
    %cst_8 = arith.constant dense<0.000000e+00> : vector<4x8xf32>
    %9 = tpu.matmul %8, %7, %cst_8 {dimension_numbers = #tpu.dot_dimension_numbers<[1], [0], [0], [1], [0, 0, 1, 1], [], []>} : vector<4x32xf32>, vector<32x8xf32>, vector<4x8xf32> -> vector<4x8xf32>
    %c0_9 = arith.constant 0 : index
    %c0_10 = arith.constant 0 : index
    %10 = vector.load %arg5[%c0_9, %c0_10] : memref<4x1xf32, #tpu.memory_space<vmem>>, vector<4x1xf32>
    %11 = vector.broadcast %10 : vector<4x1xf32> to vector<4x8xf32>
    %12 = arith.addf %9, %11 : vector<4x8xf32>
    %c0_11 = arith.constant 0 : index
    %c0_12 = arith.constant 0 : index
    %13 = vector.load %arg6[%c0_11, %c0_12] : memref<4x8xf32, #tpu.memory_space<vmem>>, vector<4x8xf32>
    tpu.vector_store %arg6[%c0_11, %c0_12], %12 {strides = array<i32>} : memref<4x8xf32, #tpu.memory_space<vmem>>, vector<4x8xf32>,
    return
  }
  func.func @transform_0(%arg0: i32) -> (i32, i32) {
    %c0_i32 = arith.constant 0 : i32
    %c0_i32_0 = arith.constant 0 : i32
    return %c0_i32, %arg0 : i32, i32
  }
  func.func @transform_1(%arg0: i32) -> (i32, i32) {
    %c0_i32 = arith.constant 0 : i32
    %c0_i32_0 = arith.constant 0 : i32
    %c0_i32_1 = arith.constant 0 : i32
    return %c0_i32, %c0_i32_0 : i32, i32
  }
  func.func @transform_2(%arg0: i32) -> (i32, i32) {
    %c0_i32 = arith.constant 0 : i32
    %c0_i32_0 = arith.constant 0 : i32
    %c0_i32_1 = arith.constant 0 : i32
    return %c0_i32, %c0_i32_0 : i32, i32
  }
  func.func @transform_3(%arg0: i32) -> (i32, i32) {
    %c0_i32 = arith.constant 0 : i32
    %c0_i32_0 = arith.constant 0 : i32
    %c0_i32_1 = arith.constant 0 : i32
    return %c0_i32, %c0_i32_0 : i32, i32
  }
  func.func @transform_4(%arg0: i32) -> (i32, i32) {
    %c0_i32 = arith.constant 0 : i32
    %c0_i32_0 = arith.constant 0 : i32
    %c0_i32_1 = arith.constant 0 : i32
    return %c0_i32, %c0_i32_0 : i32, i32
  }
  func.func @transform_5(%arg0: i32) -> (i32, i32) {
    %c0_i32 = arith.constant 0 : i32
    %c0_i32_0 = arith.constant 0 : i32
    return %c0_i32, %arg0 : i32, i32
  }
}

</mosaic_0001>

<bundles_post_ra>
// kernel: tpu_custom_call.1
= control target key start
LH: loop header
LB: loop body
LE: loop exit
PB: predicated region body
PF: predicated region fallthrough
CT: control target
= control target key end

     0   :  { %vm51_vm0 = vcmask 130048   ;;  %v328_v4 = vmov 0   ;;  %s415_s0 = inlined_call_operand.vmem [shape: f32[16,8], index: 0, kind: input, shape index: {}]   ;;  %s416_s1 = inlined_call_operand.vmem [shape: f32[32,16], index: 1, kind: input, shape index: {}]   ;;  %s417_s2 = inlined_call_operand.vmem [shape: f32[32,1], index: 2, kind: input, shape index: {}]   ;;  %s418_s3 = inlined_call_operand.vmem [shape: f32[4,32], index: 3, kind: input, shape index: {}]   ;;  %s419_s4 = inlined_call_operand.vmem [shape: f32[4,1], index: 4, kind: input, shape index: {}]   ;;  %s420_s5 = inlined_call_operand.hbm [shape: f32[4,8], index: 5, kind: output, shape index: {}]  }
   0x1   :  { %v21_v0 = vld [vmem:[%s415_s0] sm:$0xff]  ;;  %v22_v1 = vld [vmem:[%s415_s0 + $0x8] sm:$0xff]  ;;  %302 = vset.pattern.permute.xlu0 %v328_v4  ;;  %303 = vset.pattern.permute.xlu1 %v328_v4  ;;  %v29_v6 = vld [vmem:[%s417_s2 + $0x10] sm:$0xff] }
   0x2   :  { %v23_v2 = vld [vmem:[%s416_s1] sm:$0xff]  ;;  %v287_v3 = vpack.c.bf16 %v22_v1, %v21_v0 }
   0x3   :  { %270 = vmatprep.mubr.msk.f32.mxu0 %vm51_vm0, %v23_v2  ;;  %v27_v5 = vld [vmem:[%s417_s2] sm:$0xff] }
   0x4   :  { %288 = vmatprep.subr.bf16.mxu0 %v287_v3  ;;  %33 = vperm.xlu0 %302, %v27_v5  }
   0x5   :  { %10 = vsyncpa [#allocation3], 0  ;;  %290 = vmatpush3.bf16.msra.mxu0 %v287_v3  ;;  %v24_v7 = vld [vmem:[%s416_s1 + $0x8] sm:$0xff]  ;;  %43 = vperm.xlu1 %303, %v29_v6   ;;  %v25_v9 = vld [vmem:[%s416_s1 + $0x10] sm:$0xff]  ;;  %v329_v13 = vmov 0.0|0.0   ;;  %vm330_vm1 = vmmov 0  }
   0x6   :  { %v28_v8 = vld [vmem:[%s417_s2 + $0x8] sm:$0xff]  ;;  %v30_v10 = vld [vmem:[%s417_s2 + $0x18] sm:$0xff]  ;;  %v154_v12 = vld [vmem:[%s419_s4] sm:$0xf]  ;;  %291 = vmatprep.subr.bf16.mxu1 %v329_v13  ;;  %v331_v14 = vmov 0.0   ;;  %vm160_vm2 = vcmask 261120  }
   0x7   :  { %v26_v11 = vld [vmem:[%s416_s1 + $0x18] sm:$0xff]  ;;  %284 = vmatprep.mubr.msk.f32.mxu1 %vm330_vm1, %v331_v14  ;;  %v153_v33 = vld [vmem:[%s418_s3] sm:$0xf]  ;;  %s332_s4 = smov [#allocation2]   ;;  %vm234_vm3 = vcmask 60416  }
   0x8   :  { %271 = vmatmul.mubr.msk.f32.vlgmr.msra.gmra.mrb[0].mxu0 %vm51_vm0, %v24_v7  ;;  %38 = vperm.xlu0 %302, %v28_v8   ;;  %s242_s14 = sshll.u32 %s332_s4, 4  ;;  %s243_s14 = int_to_ptr.vmem [resolvable:$true] %s242_s14 }
   0x9   :  { %273 = vmatprep.mubr.msk.f32.mxu0 %vm51_vm0, %v25_v9  ;;  %48 = vperm.xlu1 %303, %v30_v10   ;;  %s304_s15 = scalar_lea.vmem %s243_s14, 64  ;;  %p309_p1 = scmp.lt.s32.totalorder %s243_s14, %s243_s14 }
   0xa   :  { %p305_p0 = scmp.ne.s32.totalorder %s243_s14, %s304_s15  ;;  %p310_p2 = scmp.lt.s32.totalorder %s304_s15, %s304_s15 }
   0xc   :  { %274 = vmatmul.mubr.msk.f32.gmra.mrb[2].mxu0 %vm51_vm0, %v26_v11  ;;  %157 = vperm.xlu0 %302, %v154_v12   ;;  %p311_p3 = por %p310_p2, %p309_p1 }
   0xe   :  { %p312_p4 = pnand %p311_p3, %p305_p0 }
  0x83   :  { %v34_v15 = vpop.permute.xlu0 %33 }
  0x84   :  { %v44_v16 = vpop.permute.xlu1 %43 }
  0x87   :  { %v39_v17 = vpop.permute.xlu0 %38 }
  0x88   :  { %v49_v23 = vpop.permute.xlu1 %48 }
  0x8b   :  { %v158_v34 = vpop.permute.xlu0 %157 }
  0xdb   :  { %v272_v18 = vpop.f32.mrb[0].mxu0 }
  0xdc   :  { %v136_v19 = vadd.f32 %v272_v18, %v39_v17  ;;  %v130_v20 = vpop.f32.mrb[1].mxu0 }
  0xdd   :  { %v131_v21 = vadd.f32 %v130_v20, %v34_v15 }
  0xde   :  { %v150_v22 = vmax.f32 %v136_v19, 0.0 }
  0xdf   :  { %v149_v24 = vmax.f32 %v131_v21, 0.0  ;;  %v275_v25 = vpop.f32.mrb[2].mxu0 }
  0xe0   :  { %v146_v26 = vadd.f32 %v275_v25, %v49_v23  ;;  %v140_v27 = vpop.f32.mrb[3].mxu0 }
  0xe1   :  { %v141_v28 = vadd.f32 %v140_v27, %v44_v16  ;;  %v292_v29 = vpack.c.bf16 %v150_v22, %v149_v24 }
  0xe2   :  { %v152_v30 = vmax.f32 %v146_v26, 0.0 }
  0xe3   :  { %v151_v31 = vmax.f32 %v141_v28, 0.0  ;;  %293 = vmatpush3.bf16.msra.mxu1 %v292_v29 }
  0xe4   :  { %294 = vmatprep.subr.bf16.mxu1 %v329_v13 }
  0xe5   :  { %v295_v32 = vpack.c.bf16 %v152_v30, %v151_v31 }
  0xe7   :  { %296 = vmatpush3.bf16.msra.mxu1 %v295_v32 }
  0xea   :  { %285 = vmatmul.mubr.msk.f32.vlgmr.msra.gmra.mrb[0].mxu1 %vm160_vm2, %v153_v33 }
 0x1bd   :  { %v230_v35 = vpop.f32.mrb[0].mxu1 }
 0x1be   :  { %v231_v36 = vadd.f32 %v230_v35, %v158_v34  ;;  %v286_v37 = vpop.f32.mrb[1].mxu1 }
 0x1c0   :  { %235 = vst.msk [vmem:[#allocation2] sm:$0xf] %vm234_vm3, %v231_v36 }
 0x1c1   :  { %315 = shalt.err (!%p312_p4)
}
 0x1c2   :  { %s316_s17 = scalar_lea.hbm %s420_s5, 64 }
 0x1c3   :  { %p317_p5 = scmp.ne.s32.totalorder %s420_s5, %s316_s17  ;;  %p320_p6 = scmp.lt.u32.totalorder %s316_s17, %s420_s5 }
 0x1c5   :  { %p322_p7 = pnand %p320_p6, %p317_p5 }
 0x1c7   :  { %325 = shalt.err (!%p322_p7)
}
 0x1c8   :  { %245 = dma.vmem_to_hbm [thread:$0]  %s243_s14, 64, %s420_s5, [#allocation3]  }
 0x1c9   :  { %326 = dma.done.wait [#allocation3], 64  }
 0x1ca   :  { %327 = vsyncadd [#allocation3], 4294967232 }
 0x1cb   :  { %249 = vsyncpa [#allocation3], 1 }

</bundles_post_ra>
